<compile_context>
chip_gen: v7x
topology: tpu7x:2x2x1
jax: 0.10.0
libtpu: 0.0.40
codegen_flags: <defaults>
</compile_context>

<pallas_src>
import math

import jax
import jax.numpy as jnp
from jax import lax
from jax.experimental import pallas as pl
from jax.experimental.pallas import tpu as pltpu

# TODO(synk): NaN ordering diverges from torch.argmax (torch treats NaN as the
# maximum); kernels assume finite inputs.
# TODO(synk): indices are int32, not int64; a flattened argmax over >= 2**31
# elements would overflow, and int64/float64 values are truncated to 32-bit
# for the comparisons.

_VMEM_LIMIT = 32 * 1024 * 1024   # fits every generation's scoped VMEM (v7x phys = 64 MiB)
_TARGET_BLOCK_BYTES = 4 << 20    # ~4 MiB streamed input blocks; 2x-buffered < 10 MiB VMEM


_NATIVE_LOWP = None


def _native_lowp_ok():
    """True on chips with a bf16 VPU (v6e / v7x); False -> upcast to f32."""
    global _NATIVE_LOWP
    if _NATIVE_LOWP is None:
        try:
            kind = jax.devices()[0].device_kind.lower()
            _NATIVE_LOWP = not any(s in kind for s in ("v2", "v3", "v4", "v5"))
        except Exception:  # pragma: no cover - conservative default
            _NATIVE_LOWP = False
    return _NATIVE_LOWP


def _acc_info(dtype):
    """Comparison dtype + its 'minus infinity' for the running max."""
    dtype = jnp.dtype(dtype)
    if jnp.issubdtype(dtype, jnp.floating):
        if dtype == jnp.dtype(jnp.float32) or (
                dtype == jnp.dtype(jnp.bfloat16) and _native_lowp_ok()):
            return dtype, float("-inf")
        return jnp.float32, float("-inf")
    if jnp.issubdtype(dtype, jnp.unsignedinteger):
        return jnp.uint32, 0
    return jnp.int32, int(jnp.iinfo(jnp.int32).min)


def _sublanes(dtype):
    """Packed sublane tile for the dtype (8 f32, 16 bf16, 32 int8)."""
    return 8 * max(1, 4 // jnp.dtype(dtype).itemsize)


def _largest_divisor(n, cap, step, lo=None):
    """Largest multiple of `step` that divides n, <= cap and >= lo (or None)."""
    lo = step if lo is None else lo
    m = min(cap, n)
    m -= m % step
    while m >= lo:
        if n % m == 0:
            return m
        m -= step
    return None


def _pick_rows(n_rows, row_bytes, sub=8, cap=4096, target_bytes=_TARGET_BLOCK_BYTES):
    """Row-block size: multiple of the packed sublane tile, or the full extent."""
    t = max(sub, min(cap, target_bytes // max(1, row_bytes)))
    t -= t % sub
    t = max(t, sub)
    if t >= n_rows:
        return n_rows
    return t


def _argmax_last(x2):
    """Argmax over the last axis of a 2-D array -> (N, 1) int32."""
    n, k = (int(d) for d in x2.shape)
    itemsize = x2.dtype.itemsize
    acc_dtype, neg = _acc_info(x2.dtype)
    sub = _sublanes(x2.dtype)

    # K chunk (lane axis): full K when it fits, else prefer a 128-multiple that
    # divides K (no ragged-tail masking), else the cap with tail masking.
    # NOTE: for K < 128 lane utilisation is K/128 (low-priority pathological
    # regime); rows are batched aggressively to amortise per-step overhead.
    if k <= 4096:
        tk = k
    else:
        tk = _largest_divisor(k, 4096, 128) or 4096
    mask_k = (k % tk) != 0
    to = _pick_rows(n, tk * itemsize, sub=sub, cap=4096)
    grid = (pl.cdiv(n, to), pl.cdiv(k, tk))
    last_j = grid[1] - 1

    def kernel(x_ref, o_ref, bv_ref, bi_ref):
        j = pl.program_id(1)

        @pl.when(j == 0)
        def _init():
            bv_ref[...] = jnp.full_like(bv_ref, neg)
            bi_ref[...] = jnp.zeros_like(bi_ref)

        v = x_ref[...].astype(acc_dtype)                        # (to, tk)
        col = lax.broadcasted_iota(jnp.int32, v.shape, 1)       # chunk-local cols
        if mask_k:
            v = jnp.where(col < k - j * tk, v, neg)             # ragged K tail only

        # Chunk max + first-max column, then a cheap merge into the running
        # accumulator.  Chunks arrive in increasing column order so a strict
        # '>' keeps the smallest index on ties (torch semantics).  The global
        # column offset j*tk is added on the (to, 1) reduced result, keeping
        # index math off the per-element path.
        cm = jnp.max(v, axis=1, keepdims=True)                  # (to, 1)
        ci = jnp.min(jnp.where(v == cm, col, tk), axis=1, keepdims=True) + j * tk
        take = cm > bv_ref[...]
        bv_ref[...] = jnp.where(take, cm, bv_ref[...])
        bi_ref[...] = jnp.where(take, ci, bi_ref[...])

        @pl.when(j == last_j)
        def _fin():
            # Narrow (to, 1) store; output traffic is ~1/K of the streamed
            # input so the masked-store tail is negligible.
            o_ref[...] = bi_ref[...]

    return pl.pallas_call(
        kernel,
        out_shape=jax.ShapeDtypeStruct((n, 1), jnp.int32),
        grid=grid,
        in_specs=[pl.BlockSpec((to, tk), lambda i, j: (i, j))],
        out_specs=pl.BlockSpec((to, 1), lambda i, j: (i, 0)),
        scratch_shapes=[pltpu.VMEM((to, 1), acc_dtype),
                        pltpu.VMEM((to, 1), jnp.int32)],
        compiler_params=pltpu.CompilerParams(
            dimension_semantics=("parallel", "arbitrary"),
            vmem_limit_bytes=_VMEM_LIMIT),
    )(x2)


def _argmax_mid(x3):
    """Argmax over the middle axis of (outer, K, inner) -> (outer, inner) int32."""
    outer, k, inner = (int(d) for d in x3.shape)
    itemsize = x3.dtype.itemsize
    acc_dtype, neg = _acc_info(x3.dtype)
    sub = _sublanes(x3.dtype)

    # Lane tile over `inner`: full extent when small, else a multiple of 128
    # (divisor preferred; a ragged last inner block is harmless because the
    # reduction runs over K and out-of-range output columns are never written
    # back).
    if inner <= 1024:
        ti = inner
    else:
        ti = _largest_divisor(inner, 1024, 128) or 512

    # Sublane tile over K: kept in-block when small, otherwise K is tiled over
    # a trailing "arbitrary" grid axis with a running (max, argmax) accumulator
    # so blocks stay near the target size on every generation.
    max_tk = max(8, _TARGET_BLOCK_BYTES // max(1, sub * ti * itemsize))
    if k <= max_tk:
        tk = k
    else:
        cap = max(8, max_tk - max_tk % 8)
        tk = _largest_divisor(k, cap, 8) or cap
    mask_k = (k % tk) != 0

    to = _pick_rows(outer, tk * ti * itemsize, sub=sub, cap=256)
    grid = (pl.cdiv(outer, to), pl.cdiv(inner, ti), pl.cdiv(k, tk))
    last_kk = grid[2] - 1

    def kernel(x_ref, o_ref, bv_ref, bi_ref):
        kk = pl.program_id(2)

        @pl.when(kk == 0)
        def _init():
            bv_ref[...] = jnp.full_like(bv_ref, neg)
            bi_ref[...] = jnp.zeros_like(bi_ref)

        x = x_ref[...].astype(acc_dtype)                        # (to, tk, ti)
        ids = lax.broadcasted_iota(jnp.int32, x.shape, 1)       # block-local K ids
        if mask_k:
            x = jnp.where(ids < k - kk * tk, x, neg)            # ragged K tail only

        m = jnp.max(x, axis=1, keepdims=True)                   # (to, 1, ti)
        ci = jnp.min(jnp.where(x == m, ids, tk), axis=1) + kk * tk   # (to, ti)
        m2 = jnp.max(m, axis=1)                                  # (to, ti), size-1 reduce
        take = m2 > bv_ref[...]
        bv_ref[...] = jnp.where(take, m2, bv_ref[...])
        bi_ref[...] = jnp.where(take, ci, bi_ref[...])

        @pl.when(kk == last_kk)
        def _fin():
            o_ref[...] = bi_ref[...]

    return pl.pallas_call(
        kernel,
        out_shape=jax.ShapeDtypeStruct((outer, inner), jnp.int32),
        grid=grid,
        in_specs=[pl.BlockSpec((to, tk, ti), lambda i, j, kk: (i, kk, j))],
        out_specs=pl.BlockSpec((to, ti), lambda i, j, kk: (i, j)),
        scratch_shapes=[pltpu.VMEM((to, ti), acc_dtype),
                        pltpu.VMEM((to, ti), jnp.int32)],
        compiler_params=pltpu.CompilerParams(
            dimension_semantics=("parallel", "parallel", "arbitrary"),
            vmem_limit_bytes=_VMEM_LIMIT),
    )(x3)


def _argmax_flat(x):
    """Global argmax over the flattened tensor -> int32 scalar."""
    total = max(int(math.prod(x.shape)), 1)
    itemsize = x.dtype.itemsize
    acc_dtype, neg = _acc_info(x.dtype)
    sub = _sublanes(x.dtype)
    i32_max = int(jnp.iinfo(jnp.int32).max)

    # Lane width: a divisor of `total` gives a zero-copy (r, c) reshape with no
    # padding and no per-element masking.  Prefer multiples of 128 (dense
    # lanes); any divisor >= 128 still avoids the pad copy.
    c = (_largest_divisor(total, 8192, 128)
         or _largest_divisor(total, 8192, 1, lo=128))
    padded = False
    if c is None:
        if total < 128:
            c = total                      # single short row, no pad
        else:
            # TODO(synk): rare fallback (e.g. prime totals >= 128): jnp.pad is
            # an extra HBM round-trip of the tensor.
            c = min(total, 8192)
            padded = (total % c) != 0
    r = pl.cdiv(total, c)

    flat = x.reshape(-1)
    if padded:
        flat = jnp.pad(flat, (0, r * c - total))
    x2 = flat.reshape(r, c)

    tr = _pick_rows(r, c * itemsize, sub=sub, cap=4096)
    nrb = pl.cdiv(r, tr)
    # Two row partitions -> the "parallel" axis feeds both TensorCores on v7x
    # megacore; partial (max, idx) results are combined by a tiny JAX epilogue.
    npart = 2 if nrb >= 2 else 1
    steps = pl.cdiv(nrb, npart)

    def kernel(x_ref, bv_ref, bi_ref):
        p = pl.program_id(0)
        s = pl.program_id(1)

        @pl.when(s == 0)
        def _init():
            bv_ref[0] = jnp.full((1, 1), neg, acc_dtype)
            bi_ref[0] = jnp.zeros((1, 1), jnp.int32)

        blk = p * steps + s                                   # logical row-block id
        row0 = blk * tr
        v = x_ref[...].astype(acc_dtype)                      # (tr, c)
        col = lax.broadcasted_iota(jnp.int32, v.shape, 1)
        if padded:
            rowe = lax.broadcasted_iota(jnp.int32, v.shape, 0)
            v = jnp.where((rowe + row0) * c + col < total, v, neg)

        # Per-row lane reduce (max + first-max column); the flat index is then
        # reconstructed from cheap (tr, 1) row math -- no per-element global
        # iota / multiply on the hot path.
        rm = jnp.max(v, axis=1, keepdims=True)                                # (tr, 1)
        cm = jnp.min(jnp.where(v == rm, col, c), axis=1, keepdims=True)       # (tr, 1)
        rows = lax.broadcasted_iota(jnp.int32, (tr, 1), 0) + row0
        rm = jnp.where(rows < r, rm, neg)      # ragged edge rows / clamped tail blocks
        m = jnp.max(rm, axis=0, keepdims=True)                                # (1, 1)
        fi = jnp.min(jnp.where(rm == m, rows * c + cm, i32_max),
                     axis=0, keepdims=True)                                   # (1, 1)

        take = m > bv_ref[0]                   # increasing block order: ties keep old
        bv_ref[0] = jnp.where(take, m, bv_ref[0])
        bi_ref[0] = jnp.where(take, fi, bi_ref[0])

    pmax, pidx = pl.pallas_call(
        kernel,
        out_shape=(jax.ShapeDtypeStruct((npart, 1, 1), acc_dtype),
                   jax.ShapeDtypeStruct((npart, 1, 1), jnp.int32)),
        grid=(npart, steps),
        in_specs=[pl.BlockSpec(
            (tr, c), lambda p, s: (jnp.minimum(p * steps + s, nrb - 1), 0))],
        out_specs=(pl.BlockSpec((1, 1, 1), lambda p, s: (p, 0, 0)),
                   pl.BlockSpec((1, 1, 1), lambda p, s: (p, 0, 0))),
        compiler_params=pltpu.CompilerParams(
            dimension_semantics=("parallel", "arbitrary"),
            vmem_limit_bytes=_VMEM_LIMIT),
    )(x2)

    if npart == 1:
        return pidx[0, 0, 0]
    best = jnp.argmax(pmax[:, 0, 0])          # ties -> first partition = smaller index
    return pidx[best, 0, 0]


def argmax_pallas(x, dim=None):
    """Pallas equivalent of torch.argmax(x, dim=dim) (int32 indices)."""
    if dim is None:
        return _argmax_flat(x)

    dim = dim % x.ndim
    shape = x.shape
    outer = int(math.prod(shape[:dim])) if dim > 0 else 1
    k = int(shape[dim])
    inner = int(math.prod(shape[dim + 1:])) if dim + 1 < x.ndim else 1
    out_shape = shape[:dim] + shape[dim + 1:]

    if inner == 1:
        out = _argmax_last(x.reshape(outer, k))        # (outer, 1)
    else:
        out = _argmax_mid(x.reshape(outer, k, inner))  # (outer, inner)
    return out.reshape(out_shape)


if __name__ == "__main__":
    key = jax.random.PRNGKey(0)
    k0, k1, k2, k3 = jax.random.split(key, 4)

    # NCHW feature map, as the PyTorch module would typically see.
    x = jax.random.normal(k0, (2, 4, 16, 16), dtype=jnp.float32)

    # ArgMax(dim=1): channel argmax (segmentation-head case) -> mid-axis kernel.
    out1 = jax.block_until_ready(argmax_pallas(x, dim=1))
    assert out1.shape == (2, 16, 16)
    assert bool(jnp.all(out1 == jnp.argmax(x, axis=1).astype(jnp.int32)))

    # ArgMax(dim=-1): trailing-axis kernel.
    out3 = jax.block_until_ready(argmax_pallas(x, dim=-1))
    assert out3.shape == (2, 4, 16)
    assert bool(jnp.all(out3 == jnp.argmax(x, axis=-1).astype(jnp.int32)))

    # ArgMax(dim=None): global argmax, partitioned flat kernel.
    out_none = jax.block_until_ready(argmax_pallas(x, dim=None))
    assert out_none.shape == ()
    assert int(out_none) == int(jnp.argmax(x))

    # Larger K with an exact divisor tile: no ragged-tail masking.
    y = jax.random.normal(k1, (8, 2304), dtype=jnp.float32)
    outy = jax.block_until_ready(argmax_pallas(y, dim=1))
    assert bool(jnp.all(outy == jnp.argmax(y, axis=1).astype(jnp.int32)))

    # Leading-axis reduction -> mid kernel with the inner axis tiled.
    outy0 = jax.block_until_ready(argmax_pallas(y, dim=0))
    assert bool(jnp.all(outy0 == jnp.argmax(y, axis=0).astype(jnp.int32)))

    # Awkward K (> chunk cap, no 128-multiple divisor): ragged-tail mask path.
    z = jax.random.normal(k2, (4, 4100), dtype=jnp.float32)
    outz = jax.block_until_ready(argmax_pallas(z, dim=-1))
    assert bool(jnp.all(outz == jnp.argmax(z, axis=-1).astype(jnp.int32)))
    outzf = jax.block_until_ready(argmax_pallas(z, dim=None))
    assert int(outzf) == int(jnp.argmax(z))

    # bf16 input: native low-precision compare path on v6e/v7x.
    xb = jax.random.normal(k3, (2, 4, 16, 16), dtype=jnp.bfloat16)
    outb = jax.block_until_ready(argmax_pallas(xb, dim=1))
    assert bool(jnp.all(outb == jnp.argmax(xb, axis=1).astype(jnp.int32)))

    print("KERNEL_OK")
</pallas_src>

<mosaic_0001>
module attributes {stable_mosaic.version = 11 : i64} {
  func.func @kernel(%arg0: i32, %arg1: i32, %arg2: i32, %arg3: memref<2x4x256xf32, #tpu.memory_space<vmem>>, %arg4: memref<2x256xi32, #tpu.memory_space<vmem>>, %arg5: memref<2x256xf32, #tpu.memory_space<vmem>>, %arg6: memref<2x256xi32, #tpu.memory_space<vmem>>) attributes {dimension_semantics = [#tpu.dimension_semantics<parallel>, #tpu.dimension_semantics<parallel>, #tpu.dimension_semantics<arbitrary>], iteration_bounds = array<i64: 1, 1, 1>, scalar_prefetch = 0 : i64, scratch_operands = 2 : i64, tpu.core_type = #tpu.core_type<tc>, window_params = [{transform_indices = @transform_0, window_bounds = array<i64: 2, 4, 256>}, {transform_indices = @transform_1, window_bounds = array<i64: 2, 256>}]} {
    %c0_i32 = arith.constant 0 : i32
    %0 = arith.cmpi eq, %arg2, %c0_i32 : i32
    %1 = arith.extui %0 : i1 to i32
    %c0_i32_0 = arith.constant 0 : i32
    %2 = arith.cmpi ne, %1, %c0_i32_0 : i32
    scf.if %2 {
      %cst_18 = arith.constant 0xFF800000 : f32
      %27 = vector.broadcast %cst_18 : f32 to vector<2x256xf32>
      %c0_19 = arith.constant 0 : index
      %c0_20 = arith.constant 0 : index
      %28 = vector.load %arg5[%c0_19, %c0_20] : memref<2x256xf32, #tpu.memory_space<vmem>>, vector<2x256xf32>
      tpu.vector_store %arg5[%c0_19, %c0_20], %27 {strides = array<i32>} : memref<2x256xf32, #tpu.memory_space<vmem>>, vector<2x256xf32>,
      %c0_i32_21 = arith.constant 0 : i32
      %29 = vector.broadcast %c0_i32_21 : i32 to vector<2x256xi32>
      %c0_22 = arith.constant 0 : index
      %c0_23 = arith.constant 0 : index
      %30 = vector.load %arg6[%c0_22, %c0_23] : memref<2x256xi32, #tpu.memory_space<vmem>>, vector<2x256xi32>
      tpu.vector_store %arg6[%c0_22, %c0_23], %29 {strides = array<i32>} : memref<2x256xi32, #tpu.memory_space<vmem>>, vector<2x256xi32>,
    } else {
    }
    %c0 = arith.constant 0 : index
    %c0_1 = arith.constant 0 : index
    %c0_2 = arith.constant 0 : index
    %3 = vector.load %arg3[%c0, %c0_1, %c0_2] : memref<2x4x256xf32, #tpu.memory_space<vmem>>, vector<2x4x256xf32>
    %4 = tpu.iota {dimensions = array<i32: 1>} : vector<2x4x256xi32>
    %cst = arith.constant dense<0xFF800000> : vector<2x256xf32>
    %5 = vector.multi_reduction <maximumf>, %3, %cst [1] : vector<2x4x256xf32> to vector<2x256xf32>
    %6 = vector.shape_cast %5 : vector<2x256xf32> to vector<2x1x256xf32>
    %7 = vector.broadcast %6 : vector<2x1x256xf32> to vector<2x4x256xf32>
    %8 = arith.cmpf oeq, %3, %7 : vector<2x4x256xf32>
    %c4_i32 = arith.constant 4 : i32
    %9 = vector.broadcast %c4_i32 : i32 to vector<2x4x256xi32>
    %10 = arith.select %8, %4, %9 : vector<2x4x256xi1>, vector<2x4x256xi32>
    %cst_3 = arith.constant dense<2147483647> : vector<2x256xi32>
    %11 = vector.multi_reduction <minsi>, %10, %cst_3 [1] : vector<2x4x256xi32> to vector<2x256xi32>
    %c4_i32_4 = arith.constant 4 : i32
    %12 = arith.muli %arg2, %c4_i32_4 : i32
    %13 = vector.broadcast %12 : i32 to vector<2x256xi32>
    %14 = arith.addi %11, %13 : vector<2x256xi32>
    %cst_5 = arith.constant dense<0xFF800000> : vector<2x256xf32>
    %15 = vector.multi_reduction <maximumf>, %6, %cst_5 [1] : vector<2x1x256xf32> to vector<2x256xf32>
    %c0_6 = arith.constant 0 : index
    %c0_7 = arith.constant 0 : index
    %16 = vector.load %arg5[%c0_6, %c0_7] : memref<2x256xf32, #tpu.memory_space<vmem>>, vector<2x256xf32>
    %17 = arith.cmpf ogt, %15, %16 : vector<2x256xf32>
    %c0_8 = arith.constant 0 : index
    %c0_9 = arith.constant 0 : index
    %18 = vector.load %arg5[%c0_8, %c0_9] : memref<2x256xf32, #tpu.memory_space<vmem>>, vector<2x256xf32>
    %19 = arith.select %17, %15, %18 : vector<2x256xi1>, vector<2x256xf32>
    %c0_10 = arith.constant 0 : index
    %c0_11 = arith.constant 0 : index
    %20 = vector.load %arg5[%c0_10, %c0_11] : memref<2x256xf32, #tpu.memory_space<vmem>>, vector<2x256xf32>
    tpu.vector_store %arg5[%c0_10, %c0_11], %19 {strides = array<i32>} : memref<2x256xf32, #tpu.memory_space<vmem>>, vector<2x256xf32>,
    %c0_12 = arith.constant 0 : index
    %c0_13 = arith.constant 0 : index
    %21 = vector.load %arg6[%c0_12, %c0_13] : memref<2x256xi32, #tpu.memory_space<vmem>>, vector<2x256xi32>
    %22 = arith.select %17, %14, %21 : vector<2x256xi1>, vector<2x256xi32>
    %c0_14 = arith.constant 0 : index
    %c0_15 = arith.constant 0 : index
    %23 = vector.load %arg6[%c0_14, %c0_15] : memref<2x256xi32, #tpu.memory_space<vmem>>, vector<2x256xi32>
    tpu.vector_store %arg6[%c0_14, %c0_15], %22 {strides = array<i32>} : memref<2x256xi32, #tpu.memory_space<vmem>>, vector<2x256xi32>,
    %c0_i32_16 = arith.constant 0 : i32
    %24 = arith.cmpi eq, %arg2, %c0_i32_16 : i32
    %25 = arith.extui %24 : i1 to i32
    %c0_i32_17 = arith.constant 0 : i32
    %26 = arith.cmpi ne, %25, %c0_i32_17 : i32
    scf.if %26 {
      %c0_18 = arith.constant 0 : index
      %c0_19 = arith.constant 0 : index
      %27 = vector.load %arg6[%c0_18, %c0_19] : memref<2x256xi32, #tpu.memory_space<vmem>>, vector<2x256xi32>
      %c0_20 = arith.constant 0 : index
      %c0_21 = arith.constant 0 : index
      %28 = vector.load %arg4[%c0_20, %c0_21] : memref<2x256xi32, #tpu.memory_space<vmem>>, vector<2x256xi32>
      tpu.vector_store %arg4[%c0_20, %c0_21], %27 {strides = array<i32>} : memref<2x256xi32, #tpu.memory_space<vmem>>, vector<2x256xi32>,
    } else {
    }
    return
  }
  func.func @transform_0(%arg0: i32, %arg1: i32, %arg2: i32) -> (i32, i32, i32) {
    %c0_i32 = arith.constant 0 : i32
    return %arg0, %arg2, %arg1 : i32, i32, i32
  }
  func.func @transform_1(%arg0: i32, %arg1: i32, %arg2: i32) -> (i32, i32) {
    %c0_i32 = arith.constant 0 : i32
    return %arg0, %arg1 : i32, i32
  }
}

</mosaic_0001>

<bundles_post_ra>
// kernel: tpu_custom_call.1
= control target key start
LH: loop header
LB: loop body
LE: loop exit
PB: predicated region body
PF: predicated region fallthrough
CT: control target
= control target key end

     0   :  { %6 = vsyncpa [#allocation5], 0  ;;  %s427_s0 = inlined_call_operand.hbm [shape: f32[2,4,256], index: 0, kind: input, shape index: {}]   ;;  %s428_s1 = inlined_call_operand.hbm [shape: s32[2,256], index: 1, kind: output, shape index: {}]  }
   0x1   :  { %7 = vsyncpa [#allocation6], 0  ;;  %s313_s6 = smov [#allocation4]   ;;  %s265_s10 = scalar_lea.hbm %s427_s0, 256 }
   0x2   :  { %s13_s7 = sshll.u32 %s313_s6, 4  ;;  %p266_p0 = scmp.ne.s32.totalorder %s427_s0, %s265_s10  ;;  %s14_s7 = int_to_ptr.vmem [resolvable:$true] %s13_s7 }
   0x3   :  { %p269_p1 = scmp.lt.u32.totalorder %s265_s10, %s427_s0 }
   0x5   :  { %p271_p2 = pnand %p269_p1, %p266_p0 }
   0x7   :  { %274 = shalt.err (!%p271_p2)
}
   0x8   :  { %s275_s15 = scalar_lea.vmem %s14_s7, 256  ;;  %p280_p4 = scmp.lt.s32.totalorder %s14_s7, %s14_s7 }
   0x9   :  { %p276_p3 = scmp.ne.s32.totalorder %s14_s7, %s275_s15  ;;  %p281_p5 = scmp.lt.s32.totalorder %s275_s15, %s275_s15 }
   0xb   :  { %p282_p6 = por %p281_p5, %p280_p4 }
   0xd   :  { %p283_p7 = pnand %p282_p6, %p276_p3 }
   0xf   :  { %286 = shalt.err (!%p283_p7)
}
  0x10   :  { %s314_s16 = smov 128   ;;  %s315_s17 = smov 8  }
  0x11   :  { %19 = dma.hbm_to_vmem [thread:$0]  %s427_s0, 256, %s14_s7, [#allocation5], %s314_s16, %s314_s16, %s315_s17  }
  0x12   :  { %309 = dma.done.wait [#allocation5], 256  }
  0x13   :  { %310 = vsyncadd [#allocation5], 4294967040  ;;  %v316_v0 = vmov -inf   ;;  %v317_v1 = vmov 0   ;;  %vm39_vm0 = vcmask 1043456   ;;  %v29_v2 = vld [vmem:[#allocation4] sm:$0xff]  ;;  %v31_v8 = vlaneseq }
  0x14   :  { %27 = vst [vmem:[#allocation2] sm:$0xf] %v316_v0  ;;  %28 = vst [vmem:[#allocation3] sm:$0xf] %v317_v1  ;;  %v30_v3 = vld [vmem:[#allocation4 + $0x8] sm:$0xff]  ;;  %v35_v4 = vcombine.high %v29_v2, %v29_v2  ;;  %v40_v6 = vsel %vm39_vm0, %v29_v2, -inf }
  0x15   :  { %v36_v5 = vcombine.high %v30_v3, %v30_v3  ;;  %v54_v7 = vsel %vm39_vm0, %v30_v3, -inf  ;;  %v41_v9 = vrot.slane %v40_v6, 4  ;;  %v318_v13 = vmov 839922192   ;;  %s320_s0 = smov [#allocation7]  }
  0x16   :  { %v55_v10 = vrot.slane %v54_v7, 4  ;;  %v47_v11 = vsel %vm39_vm0, %v35_v4, -inf  ;;  %v79_v14 = vunpack.c.l.s4 %v318_v13  ;;  %v32_v24 = vshrl.u32 %v31_v8, 7  ;;  %s244_s20 = sshll.u32 %s320_s0, 4  ;;  %s245_s20 = int_to_ptr.vmem [resolvable:$true] %s244_s20 }
  0x17   :  { %v61_v12 = vsel %vm39_vm0, %v36_v5, -inf  ;;  %v42_v15 = vmax.f32 %v40_v6, %v41_v9  ;;  %v48_v16 = vrot.slane %v47_v11, 4  ;;  %v319_v26 = vmov 1983009808   ;;  %s287_s21 = scalar_lea.vmem %s245_s20, 64  ;;  %p292_p9 = scmp.lt.s32.totalorder %s245_s20, %s245_s20 }
  0x18   :  { %v56_v17 = vmax.f32 %v54_v7, %v55_v10  ;;  %v62_v18 = vrot.slane %v61_v12, 4  ;;  %v165_v27 = vunpack.c.l.s4 %v319_v26  ;;  %v80_v28 = vunpack.c.0.s8 %v79_v14  ;;  %p288_p8 = scmp.ne.s32.totalorder %s245_s20, %s287_s21  ;;  %p293_p10 = scmp.lt.s32.totalorder %s287_s21, %s287_s21 }
  0x19   :  { %v43_v20 = vrot.slane %v42_v15, 2  ;;  %v49_v21 = vmax.f32 %v47_v11, %v48_v16  ;;  %vm184_vm7 = vcmask 1041409   ;;  %vm186_vm8 = vcmask 1043459  }
  0x1a   :  { %v57_v22 = vrot.slane %v56_v17, 2  ;;  %v63_v23 = vmax.f32 %v61_v12, %v62_v18  ;;  %v166_v39 = vunpack.c.0.s8 %v165_v27  ;;  %v83_v40 = vsub.s32 %v80_v28, %v32_v24  ;;  %p294_p11 = por %p293_p10, %p292_p9 }
  0x1b   :  { %v347_v19 = vld.sshfl [vmem:[#allocation2] sm:$0x33 pattern:$0x76325410]  ;;  %v44_v29 = vmax.f32 %v42_v15, %v43_v20  ;;  %v50_v30 = vrot.slane %v49_v21, 2  ;;  %vm188_vm9 = vcmask 1045509  }
  0x1c   :  { %v351_v25 = vcombine.high %v347_v19, %v347_v19  ;;  %v58_v31 = vmax.f32 %v56_v17, %v57_v22  ;;  %v64_v32 = vrot.slane %v63_v23, 2  ;;  %v145_v33 = vrot.slane %v347_v19, 1  ;;  %v254_v14 = vld.sshfl [vmem:[#allocation3] sm:$0x33 pattern:$0x76325410]  ;;  %p295_p12 = pnand %p294_p11, %p288_p8 }
  0x1d   :  { %v45_v34 = vrot.slane %v44_v29, 1  ;;  %v51_v35 = vmax.f32 %v49_v21, %v50_v30  ;;  %v372_v50 = vsub.s32 %v166_v39, %v32_v24  ;;  %v84_v51 = vrot.slane %v32_v24, %v83_v40 }
  0x1e   :  { %v59_v36 = vrot.slane %v58_v31, 1  ;;  %v65_v37 = vmax.f32 %v63_v23, %v64_v32  ;;  %v146_v38 = vrot.slane %v351_v25, 1  ;;  %vm190_vm10 = vcmask 1047559  }
  0x1f   :  { %v355_v41 = vmax.f32 %v44_v29, %v45_v34  ;;  %v52_v42 = vrot.slane %v51_v35, 1  ;;  %v202_v23 = vcombine.high %v254_v14, %v254_v14  ;;  %v203_v34 = vrot.slane %v254_v14, 1 }
  0x20   :  { %v60_v43 = vmax.f32 %v58_v31, %v59_v36  ;;  %v66_v44 = vrot.slane %v65_v37, 1 }
  0x21   :  { %v357_v45 = vmax.f32 %v51_v35, %v52_v42  ;;  %vm151_vm1 = vcmp.gt.f32.partialorder %v355_v41, %v347_v19  ;;  %v204_v35 = vrot.slane %v202_v23, 1 }
  0x22   :  { %v67_v46 = vmax.f32 %v65_v37, %v66_v44  ;;  %vm361_vm2 = vcmp.gt.f32.partialorder %v60_v43, %v145_v33  ;;  %v155_v48 = vsel %vm151_vm1, %v355_v41, %v347_v19 }
  0x23   :  { %v157_v49 = vsel %vm361_vm2, %v60_v43, %v145_v33  ;;  %vm152_vm3 = vcmp.gt.f32.partialorder %v357_v45, %v351_v25  ;;  %v72_v54 = vcombine.low %v355_v41, %v357_v45 }
  0x24   :  { %v73_v52 = vcombine.low %v60_v43, %v67_v46  ;;  %vm376_vm4 = vcmp.gt.f32.partialorder %v67_v46, %v146_v38  ;;  %v156_v55 = vsel %vm152_vm3, %v357_v45, %v351_v25 }
  0x25   :  { %v158_v56 = vsel %vm376_vm4, %v67_v46, %v146_v38  ;;  %v163_v57 = vcombine.low %v155_v48, %v156_v55  ;;  %vm76_vm5 = vcmp.eq.f32.partialorder %v29_v2, %v72_v54 }
  0x26   :  { %v171_v58 = vcombine.low %v157_v49, %v158_v56  ;;  %vm77_vm6 = vcmp.eq.f32.partialorder %v30_v3, %v73_v52  ;;  %v85_v59 = vsel %vm76_vm5, %v84_v51, 4 }
  0x27   :  { %v86_v60 = vsel %vm77_vm6, %v84_v51, 4  ;;  %v170_v61 = vrot.slane %v163_v57, %v372_v50  ;;  %v87_v63 = vcombine.high %v85_v59, %v85_v59  ;;  %v89_v1 = vsel %vm39_vm0, %v85_v59, 2147483647 }
  0x28   :  { %v178_v62 = vrot.slane %v171_v58, %v372_v50  ;;  %v88_v0 = vcombine.high %v86_v60, %v86_v60  ;;  %v109_v4 = vsel %vm39_vm0, %v86_v60, 2147483647  ;;  %v90_v6 = vrot.slane %v89_v1, 4 }
  0x29   :  { %v99_v7 = vsel %vm39_vm0, %v87_v63, 2147483647  ;;  %v110_v2 = vrot.slane %v109_v4, 4 }
  0x2a   :  { %v183_v5 = vrot.slane %v178_v62, 7  ;;  %v100_v3 = vrot.slane %v99_v7, 4  ;;  %v119_v8 = vsel %vm39_vm0, %v88_v0, 2147483647  ;;  %vm91_vm11 = vcmp.lt.s32.totalorder %v89_v1, %v90_v6 }
  0x2b   :  { %vm111_vm12 = vcmp.lt.s32.totalorder %v109_v4, %v110_v2  ;;  %v120_v10 = vrot.slane %v119_v8, 4  ;;  %v92_v12 = vsel %vm91_vm11, %v89_v1, %v90_v6 }
  0x2c   :  { %v185_v9 = vsel %vm184_vm7, %v183_v5, %v170_v61  ;;  %vm101_vm13 = vcmp.lt.s32.totalorder %v99_v7, %v100_v3  ;;  %v112_v13 = vsel %vm111_vm12, %v109_v4, %v110_v2  ;;  %v93_v16 = vrot.slane %v92_v12, 2 }
  0x2d   :  { %v187_v11 = vsel %vm186_vm8, %v183_v5, %v185_v9  ;;  %v102_v17 = vsel %vm101_vm13, %v99_v7, %v100_v3  ;;  %v113_v18 = vrot.slane %v112_v13, 2  ;;  %vm121_vm14 = vcmp.lt.s32.totalorder %v119_v8, %v120_v10 }
  0x2e   :  { %v189_v15 = vsel %vm188_vm9, %v183_v5, %v187_v11  ;;  %v103_v21 = vrot.slane %v102_v17, 2  ;;  %vm94_vm15 = vcmp.lt.s32.totalorder %v92_v12, %v93_v16  ;;  %v122_v22 = vsel %vm121_vm14, %v119_v8, %v120_v10 }
  0x2f   :  { %v191_v20 = vsel %vm190_vm10, %v183_v5, %v189_v15  ;;  %vm114_vm0 = vcmp.lt.s32.totalorder %v112_v13, %v113_v18  ;;  %v95_v24 = vsel %vm94_vm15, %v92_v12, %v93_v16  ;;  %v123_v27 = vrot.slane %v122_v22, 2 }
  0x30   :  { %193 = vst [vmem:[#allocation2] sm:$0xf] %v191_v20  ;;  %vm104_vm5 = vcmp.lt.s32.totalorder %v102_v17, %v103_v21  ;;  %v115_v26 = vsel %vm114_vm0, %v112_v13, %v113_v18  ;;  %v96_v28 = vrot.slane %v95_v24, 1 }
  0x31   :  { %v105_v29 = vsel %vm104_vm5, %v102_v17, %v103_v21  ;;  %v116_v30 = vrot.slane %v115_v26, 1  ;;  %vm124_vm6 = vcmp.lt.s32.totalorder %v122_v22, %v123_v27 }
  0x32   :  { %v106_v31 = vrot.slane %v105_v29, 1  ;;  %vm97_vm11 = vcmp.lt.s32.totalorder %v95_v24, %v96_v28  ;;  %v125_v32 = vsel %vm124_vm6, %v122_v22, %v123_v27 }
  0x33   :  { %vm117_vm12 = vcmp.lt.s32.totalorder %v115_v26, %v116_v30  ;;  %v126_v33 = vrot.slane %v125_v32, 1  ;;  %v98_v36 = vsel %vm97_vm11, %v95_v24, %v96_v28 }
  0x34   :  { %vm107_vm13 = vcmp.lt.s32.totalorder %v105_v29, %v106_v31  ;;  %v118_v38 = vsel %vm117_vm12, %v115_v26, %v116_v30  ;;  %v205_v42 = vsel %vm151_vm1, %v98_v36, %v254_v14 }
  0x35   :  { %v108_v37 = vsel %vm107_vm13, %v105_v29, %v106_v31  ;;  %vm127_vm14 = vcmp.lt.s32.totalorder %v125_v32, %v126_v33  ;;  %v207_v43 = vsel %vm361_vm2, %v118_v38, %v203_v34 }
  0x36   :  { %v206_v39 = vsel %vm152_vm3, %v108_v37, %v202_v23  ;;  %v128_v40 = vsel %vm127_vm14, %v125_v32, %v126_v33 }
  0x37   :  { %v208_v44 = vsel %vm376_vm4, %v128_v40, %v204_v35  ;;  %v209_v46 = vcombine.low %v205_v42, %v206_v39 }
  0x38   :  { %v217_v48 = vcombine.low %v207_v43, %v208_v44 }
  0x39   :  { %v216_v51 = vrot.slane %v209_v46, %v372_v50 }
  0x3a   :  { %v224_v49 = vrot.slane %v217_v48, %v372_v50 }
  0x3c   :  { %v227_v52 = vrot.slane %v224_v49, 7 }
  0x3e   :  { %v228_v25 = vsel %vm184_vm7, %v227_v52, %v216_v51 }
  0x3f   :  { %v229_v45 = vsel %vm186_vm8, %v227_v52, %v228_v25 }
  0x40   :  { %v230_v19 = vsel %vm188_vm9, %v227_v52, %v229_v45 }
  0x41   :  { %v231_v41 = vsel %vm190_vm10, %v227_v52, %v230_v19 }
  0x42   :  { %232 = vst [vmem:[#allocation3] sm:$0xf] %v231_v41 }
  0x49   :  { %v236_v47 = vld [vmem:[#allocation3] sm:$0xf] }
  0x4a   :  { %237 = vst [vmem:[#allocation7] sm:$0xf] %v236_v47 }
  0x4b   :  { %298 = shalt.err (!%p295_p12)
}
  0x4c   :  { %s299_s24 = scalar_lea.hbm %s428_s1, 64 }
  0x4d   :  { %p300_p13 = scmp.ne.s32.totalorder %s428_s1, %s299_s24  ;;  %p303_p0 = scmp.lt.u32.totalorder %s299_s24, %s428_s1 }
  0x4f   :  { %p305_p1 = pnand %p303_p0, %p300_p13 }
  0x51   :  { %308 = shalt.err (!%p305_p1)
}
  0x52   :  { %247 = dma.vmem_to_hbm [thread:$0]  %s245_s20, 64, %s428_s1, [#allocation6]  }
  0x53   :  { %311 = dma.done.wait [#allocation6], 64  }
  0x54   :  { %312 = vsyncadd [#allocation6], 4294967232 }
  0x55   :  { %251 = vsyncpa [#allocation5], 1 }
  0x56   :  { %252 = vsyncpa [#allocation6], 1 }

</bundles_post_ra>
